<compile_context>
chip_gen: v7x
topology: tpu7x:2x2x1
jax: 0.10.0
libtpu: 0.0.40
codegen_flags: <defaults>
</compile_context>

<pallas_src>
import jax
import jax.numpy as jnp
from jax.experimental import pallas as pl
from jax.experimental.pallas import tpu as pltpu

BN_EPS = 1e-5
NEG_INF = -1e30   # pad value for b2's padded lanes (kills them under softmax)
LANE = 128


def _round_up(n, m):
    return ((n + m - 1) // m) * m


def cluster_project_kernel(x_ref, w1_ref, gb_ref, w2_ref, b2_ref, y_ref, z_ref):
    x = x_ref[...]                                                # [B, D] (unpadded)

    # --- cluster_projector: Linear(D -> Dp) ---
    # (bias b1 omitted: exactly cancelled by BN's batch-mean subtraction)
    h = jnp.dot(x, w1_ref[...], preferred_element_type=jnp.float32)   # [B, Dp]

    # --- BatchNorm1d(D), training-mode batch statistics (biased variance,
    #     matching PyTorch's training normalization) ---
    mean = jnp.mean(h, axis=0, keepdims=True)                     # [1, Dp]
    centered = h - mean
    var = jnp.mean(centered * centered, axis=0, keepdims=True)    # [1, Dp]

    gb = gb_ref[...]                                              # [2, Dp]
    gamma = gb[0:1, :]
    beta = gb[1:2, :]
    s = gamma * jax.lax.rsqrt(var + BN_EPS)                       # folded BN scale

    # --- affine + ReLU fused ---
    z = jnp.maximum(centered * s + beta, 0.0)                     # [B, Dp]

    # --- cluster: Linear(Dp -> Cp) + Softmax(dim=1) ---
    # b2's padded lanes hold -1e30, so exp() underflows to 0 there and the
    # padded columns contribute nothing to the softmax denominator.
    logits = jnp.dot(z, w2_ref[...], preferred_element_type=jnp.float32)
    logits = logits + b2_ref[...]                                 # [B, Cp]

    m = jnp.max(logits, axis=1, keepdims=True)
    e = jnp.exp(logits - m)
    denom = jnp.sum(e, axis=1, keepdims=True)
    r = pl.reciprocal(denom, approx=True)        # EUP vrcp (otherwise idle slot)
    r = r * (2.0 - denom * r)                    # one Newton step -> ~f32 accuracy
    y = e * r

    y_ref[...] = y.astype(y_ref.dtype)           # [B, Cp] lane-dense (unmasked vst)
    z_ref[...] = z.astype(z_ref.dtype)           # [B, Dp] lane-dense (unmasked vst)


def prepare_params(w1, b1, gamma, beta, w2, b2):
    """One-time (init-time) padding of the constant parameters.

    w1: [D, D] (pre-transposed, [in,out]); b1/gamma/beta: [1, D];
    w2: [D, C] (pre-transposed); b2: [1, C].
    Returns (w1_p [D,Dp], gb_p [2,Dp], w2_p [Dp,Cp], b2_p [1,Cp]).
    """
    del b1  # mathematically cancelled by training-mode BatchNorm; never loaded.
    D = w1.shape[0]
    C = w2.shape[1]
    Dp = _round_up(D, LANE)
    Cp = _round_up(C, LANE)
    w1_p = jnp.pad(w1, ((0, 0), (0, Dp - D)))                     # pad out-dim only
    gb_p = jnp.pad(jnp.concatenate([gamma, beta], axis=0),
                   ((0, 0), (0, Dp - D)))                         # [2, Dp], zeros
    w2_p = jnp.pad(w2, ((0, Dp - D), (0, Cp - C)))                # [Dp, Cp], zeros
    b2_p = jnp.pad(b2, ((0, 0), (0, Cp - C)), constant_values=NEG_INF)
    return w1_p, gb_p, w2_p, b2_p


def cluster_project(x, w1_p, gb_p, w2_p, b2_p):
    """Fused forward.  x: [B, D] (unpadded); params from prepare_params().

    Returns PADDED slabs (y_p [B, Cp], z_p [B, Dp]); columns beyond the real
    C / D are exactly 0. Slice in the consumer if unpadded shapes are needed.
    """
    B = x.shape[0]
    Dp = w1_p.shape[1]
    Cp = w2_p.shape[1]
    vmem = pl.BlockSpec(memory_space=pltpu.MemorySpace.VMEM)
    return pl.pallas_call(
        cluster_project_kernel,
        out_shape=(
            jax.ShapeDtypeStruct((B, Cp), jnp.float32),   # y (padded softmax probs)
            jax.ShapeDtypeStruct((B, Dp), jnp.float32),   # z (padded latent)
        ),
        in_specs=[vmem, vmem, vmem, vmem, vmem],
        out_specs=(vmem, vmem),
    )(x, w1_p, gb_p, w2_p, b2_p)


def init_params(key, latent_dim, n_clusters):
    """Deterministic synthetic parameters (PyTorch-like uniform init)."""
    k1, k2, k3, k4 = jax.random.split(key, 4)
    bound1 = 1.0 / jnp.sqrt(latent_dim)
    # Stored already transposed: [in, out]
    w1 = jax.random.uniform(k1, (latent_dim, latent_dim), jnp.float32,
                            -bound1, bound1)
    b1 = jax.random.uniform(k2, (1, latent_dim), jnp.float32, -bound1, bound1)
    gamma = jnp.ones((1, latent_dim), jnp.float32)
    beta = jnp.zeros((1, latent_dim), jnp.float32)
    bound2 = 1.0 / jnp.sqrt(latent_dim)
    w2 = jax.random.uniform(k3, (latent_dim, n_clusters), jnp.float32,
                            -bound2, bound2)
    b2 = jax.random.uniform(k4, (1, n_clusters), jnp.float32, -bound2, bound2)
    return w1, b1, gamma, beta, w2, b2


if __name__ == "__main__":
    B = 8            # batch
    latent_dim = 32
    n_clusters = 4

    key = jax.random.PRNGKey(0)
    kx, kp = jax.random.split(key)
    x = jax.random.normal(kx, (B, latent_dim), jnp.float32)
    params = init_params(kp, latent_dim, n_clusters)

    # One-time parameter padding (out of the hot path).
    padded = prepare_params(*params)
    padded = jax.block_until_ready(padded)

    # Hot path: single pallas_call, no per-call padding / slicing.
    y_p, z_p = cluster_project(x, *padded)
    jax.block_until_ready((y_p, z_p))

    # Slice padded slabs only for the correctness check (consumer-side).
    y = y_p[:, :n_clusters]
    z = z_p[:, :latent_dim]

    # Plain-JAX reference (faithful to the PyTorch module, b1 included).
    w1, b1, gamma, beta, w2, b2 = params
    h = x @ w1 + b1
    mean = h.mean(0, keepdims=True)
    var = ((h - mean) ** 2).mean(0, keepdims=True)
    z_ref = jnp.maximum((h - mean) / jnp.sqrt(var + BN_EPS) * gamma + beta, 0.0)
    logits = z_ref @ w2 + b2
    y_ref = jax.nn.softmax(logits, axis=1)

    assert y.shape == (B, n_clusters) and z.shape == (B, latent_dim)
    assert jnp.allclose(z, z_ref, atol=1e-4, rtol=1e-4)
    assert jnp.allclose(y, y_ref, atol=1e-4, rtol=1e-4)
    assert jnp.allclose(y.sum(axis=1), 1.0, atol=1e-4)
    # Padded lanes must be exactly zero (documented contract for consumers).
    assert jnp.all(y_p[:, n_clusters:] == 0.0)
    assert jnp.all(z_p[:, latent_dim:] == 0.0)

    print("KERNEL_OK")
</pallas_src>

<mosaic_0001>
module attributes {stable_mosaic.version = 11 : i64} {
  func.func @cluster_project_kernel(%arg0: memref<8x32xf32, #tpu.memory_space<vmem>>, %arg1: memref<32x128xf32, #tpu.memory_space<vmem>>, %arg2: memref<2x128xf32, #tpu.memory_space<vmem>>, %arg3: memref<128x128xf32, #tpu.memory_space<vmem>>, %arg4: memref<1x128xf32, #tpu.memory_space<vmem>>, %arg5: memref<8x128xf32, #tpu.memory_space<vmem>>, %arg6: memref<8x128xf32, #tpu.memory_space<vmem>>) attributes {dimension_semantics = [], scalar_prefetch = 0 : i64, scratch_operands = 0 : i64, tpu.core_type = #tpu.core_type<tc>} {
    %c0 = arith.constant 0 : index
    %c0_0 = arith.constant 0 : index
    %0 = vector.load %arg0[%c0, %c0_0] : memref<8x32xf32, #tpu.memory_space<vmem>>, vector<8x32xf32>
    %c0_1 = arith.constant 0 : index
    %c0_2 = arith.constant 0 : index
    %1 = vector.load %arg1[%c0_1, %c0_2] : memref<32x128xf32, #tpu.memory_space<vmem>>, vector<32x128xf32>
    %cst = arith.constant dense<0.000000e+00> : vector<8x128xf32>
    %2 = tpu.matmul %0, %1, %cst {dimension_numbers = #tpu.dot_dimension_numbers<[1], [0], [0], [1], [0, 0, 1, 1], [], []>} : vector<8x32xf32>, vector<32x128xf32>, vector<8x128xf32> -> vector<8x128xf32>
    %cst_3 = arith.constant dense<0.000000e+00> : vector<128xf32>
    %3 = vector.multi_reduction <add>, %2, %cst_3 [0] : vector<8x128xf32> to vector<128xf32>
    %4 = vector.shape_cast %3 : vector<128xf32> to vector<1x128xf32>
    %cst_4 = arith.constant 8.000000e+00 : f32
    %5 = vector.broadcast %cst_4 : f32 to vector<1x128xf32>
    %6 = arith.divf %4, %5 : vector<1x128xf32>
    %7 = vector.broadcast %6 : vector<1x128xf32> to vector<8x128xf32>
    %8 = arith.subf %2, %7 : vector<8x128xf32>
    %9 = arith.mulf %8, %8 : vector<8x128xf32>
    %cst_5 = arith.constant dense<0.000000e+00> : vector<128xf32>
    %10 = vector.multi_reduction <add>, %9, %cst_5 [0] : vector<8x128xf32> to vector<128xf32>
    %11 = vector.shape_cast %10 : vector<128xf32> to vector<1x128xf32>
    %cst_6 = arith.constant 8.000000e+00 : f32
    %12 = vector.broadcast %cst_6 : f32 to vector<1x128xf32>
    %13 = arith.divf %11, %12 : vector<1x128xf32>
    %c0_7 = arith.constant 0 : index
    %c0_8 = arith.constant 0 : index
    %14 = vector.load %arg2[%c0_7, %c0_8] : memref<2x128xf32, #tpu.memory_space<vmem>>, vector<2x128xf32>
    %15 = vector.extract_strided_slice %14 {offsets = [0, 0], sizes = [1, 128], strides = [1, 1]} : vector<2x128xf32> to vector<1x128xf32>
    %16 = vector.extract_strided_slice %14 {offsets = [1, 0], sizes = [1, 128], strides = [1, 1]} : vector<2x128xf32> to vector<1x128xf32>
    %cst_9 = arith.constant 9.99999974E-6 : f32
    %17 = vector.broadcast %cst_9 : f32 to vector<1x128xf32>
    %18 = arith.addf %13, %17 : vector<1x128xf32>
    %19 = math.rsqrt %18 : vector<1x128xf32>
    %20 = arith.mulf %15, %19 : vector<1x128xf32>
    %21 = vector.broadcast %20 : vector<1x128xf32> to vector<8x128xf32>
    %22 = arith.mulf %8, %21 : vector<8x128xf32>
    %23 = vector.broadcast %16 : vector<1x128xf32> to vector<8x128xf32>
    %24 = arith.addf %22, %23 : vector<8x128xf32>
    %cst_10 = arith.constant 0.000000e+00 : f32
    %25 = vector.broadcast %cst_10 : f32 to vector<8x128xf32>
    %26 = arith.maximumf %24, %25 : vector<8x128xf32>
    %c0_11 = arith.constant 0 : index
    %c0_12 = arith.constant 0 : index
    %27 = vector.load %arg3[%c0_11, %c0_12] : memref<128x128xf32, #tpu.memory_space<vmem>>, vector<128x128xf32>
    %cst_13 = arith.constant dense<0.000000e+00> : vector<8x128xf32>
    %28 = tpu.matmul %26, %27, %cst_13 {dimension_numbers = #tpu.dot_dimension_numbers<[1], [0], [0], [1], [0, 0, 1, 1], [], []>} : vector<8x128xf32>, vector<128x128xf32>, vector<8x128xf32> -> vector<8x128xf32>
    %c0_14 = arith.constant 0 : index
    %c0_15 = arith.constant 0 : index
    %29 = vector.load %arg4[%c0_14, %c0_15] : memref<1x128xf32, #tpu.memory_space<vmem>>, vector<1x128xf32>
    %30 = vector.broadcast %29 : vector<1x128xf32> to vector<8x128xf32>
    %31 = arith.addf %28, %30 : vector<8x128xf32>
    %cst_16 = arith.constant dense<0xFF800000> : vector<8xf32>
    %32 = vector.multi_reduction <maximumf>, %31, %cst_16 [1] : vector<8x128xf32> to vector<8xf32>
    %33 = vector.shape_cast %32 : vector<8xf32> to vector<8x1xf32>
    %34 = vector.broadcast %33 : vector<8x1xf32> to vector<8x128xf32>
    %35 = arith.subf %31, %34 : vector<8x128xf32>
    %36 = math.exp %35 : vector<8x128xf32>
    %cst_17 = arith.constant dense<0.000000e+00> : vector<8xf32>
    %37 = vector.multi_reduction <add>, %36, %cst_17 [1] : vector<8x128xf32> to vector<8xf32>
    %38 = vector.shape_cast %37 : vector<8xf32> to vector<8x1xf32>
    %39 = tpu.reciprocal %38 {approx = true} : vector<8x1xf32> -> vector<8x1xf32>
    %40 = arith.mulf %38, %39 : vector<8x1xf32>
    %cst_18 = arith.constant 2.000000e+00 : f32
    %41 = vector.broadcast %cst_18 : f32 to vector<8x1xf32>
    %42 = arith.subf %41, %40 : vector<8x1xf32>
    %43 = arith.mulf %39, %42 : vector<8x1xf32>
    %44 = vector.broadcast %43 : vector<8x1xf32> to vector<8x128xf32>
    %45 = arith.mulf %36, %44 : vector<8x128xf32>
    %c0_19 = arith.constant 0 : index
    %c0_20 = arith.constant 0 : index
    %46 = vector.load %arg5[%c0_19, %c0_20] : memref<8x128xf32, #tpu.memory_space<vmem>>, vector<8x128xf32>
    tpu.vector_store %arg5[%c0_19, %c0_20], %45 {strides = array<i32>} : memref<8x128xf32, #tpu.memory_space<vmem>>, vector<8x128xf32>,
    %c0_21 = arith.constant 0 : index
    %c0_22 = arith.constant 0 : index
    %47 = vector.load %arg6[%c0_21, %c0_22] : memref<8x128xf32, #tpu.memory_space<vmem>>, vector<8x128xf32>
    tpu.vector_store %arg6[%c0_21, %c0_22], %26 {strides = array<i32>} : memref<8x128xf32, #tpu.memory_space<vmem>>, vector<8x128xf32>,
    return
  }
}

</mosaic_0001>

<bundles_post_ra>
// kernel: tpu_custom_call.1
= control target key start
LH: loop header
LB: loop body
LE: loop exit
PB: predicated region body
PF: predicated region fallthrough
CT: control target
= control target key end

     0   :  { %12 = vsyncpa [#allocation3], 0  ;;  %s662_s0 = inlined_call_operand.hbm [shape: f32[8,32], index: 0, kind: input, shape index: {}]   ;;  %s663_s1 = inlined_call_operand.hbm [shape: f32[32,128], index: 1, kind: input, shape index: {}]   ;;  %s664_s2 = inlined_call_operand.vmem [shape: f32[2,128], index: 2, kind: input, shape index: {}]   ;;  %s665_s3 = inlined_call_operand.hbm [shape: f32[128,128], index: 3, kind: input, shape index: {}]   ;;  %s666_s4 = inlined_call_operand.vmem [shape: f32[1,128], index: 4, kind: input, shape index: {}]   ;;  %s667_s5 = inlined_call_operand.hbm [shape: f32[8,128], index: 5, kind: output, shape index: {0}]   ;;  %s668_s6 = inlined_call_operand.hbm [shape: f32[8,128], index: 6, kind: output, shape index: {1}]  }
   0x1   :  { %13 = vsyncpa [#allocation6], 0 }
   0x2   :  { %14 = vsyncpa [#allocation4], 0 }
   0x3   :  { %15 = vsyncpa [#allocation10], 0  ;;  %s545_s21 = smov [#allocation5]   ;;  %s427_s25 = scalar_lea.hbm %s663_s1, 512 }
   0x4   :  { %s31_s22 = sshll.u32 %s545_s21, 4  ;;  %p428_p0 = scmp.ne.s32.totalorder %s663_s1, %s427_s25  ;;  %s32_s22 = int_to_ptr.vmem [resolvable:$true] %s31_s22 }
   0x5   :  { %p431_p1 = scmp.lt.u32.totalorder %s427_s25, %s663_s1 }
   0x7   :  { %p433_p2 = pnand %p431_p1, %p428_p0 }
   0x9   :  { %436 = shalt.err (!%p433_p2)
}
   0xa   :  { %s437_s30 = scalar_lea.vmem %s32_s22, 512  ;;  %p442_p4 = scmp.lt.s32.totalorder %s32_s22, %s32_s22 }
   0xb   :  { %p438_p3 = scmp.ne.s32.totalorder %s32_s22, %s437_s30  ;;  %p443_p5 = scmp.lt.s32.totalorder %s437_s30, %s437_s30 }
   0xd   :  { %p444_p6 = por %p443_p5, %p442_p4 }
   0xf   :  { %p445_p7 = pnand %p444_p6, %p438_p3 }
  0x11   :  { %448 = shalt.err (!%p445_p7)
}
  0x12   :  { %s546_s7 = smov 128   ;;  %s547_s8 = smov 8  }
  0x13   :  { %37 = dma.hbm_to_vmem [thread:$0]  %s663_s1, 512, %s32_s22, [#allocation6], %s546_s7, %s546_s7, %s547_s8  }
  0x14   :  { %s548_s11 = smov [#allocation2]   ;;  %s549_s13 = smov [#allocation7]  }
  0x15   :  { %s22_s12 = sshll.u32 %s548_s11, 4  ;;  %s45_s14 = sshll.u32 %s549_s13, 4  ;;  %s23_s12 = int_to_ptr.vmem [resolvable:$true] %s22_s12  ;;  %s46_s14 = int_to_ptr.vmem [resolvable:$true] %s45_s14 }
  0x16   :  { %s449_s17 = scalar_lea.hbm %s662_s0, 128 }
  0x17   :  { %p450_p8 = scmp.ne.s32.totalorder %s662_s0, %s449_s17  ;;  %p453_p9 = scmp.lt.u32.totalorder %s449_s17, %s662_s0 }
  0x19   :  { %p455_p10 = pnand %p453_p9, %p450_p8 }
  0x1b   :  { %458 = shalt.err (!%p455_p10)
}
  0x1c   :  { %s459_s1 = scalar_lea.vmem %s23_s12, 128  ;;  %p464_p12 = scmp.lt.s32.totalorder %s23_s12, %s23_s12 }
  0x1d   :  { %p460_p11 = scmp.ne.s32.totalorder %s23_s12, %s459_s1  ;;  %p465_p13 = scmp.lt.s32.totalorder %s459_s1, %s459_s1 }
  0x1f   :  { %p466_p0 = por %p465_p13, %p464_p12 }
  0x21   :  { %p467_p1 = pnand %p466_p0, %p460_p11 }
  0x23   :  { %470 = shalt.err (!%p467_p1)
}
  0x24   :  { %25 = dma.hbm_to_vmem [thread:$0]  %s662_s0, 128, %s23_s12, [#allocation3]  }
  0x25   :  { %s471_s26 = scalar_lea.hbm %s665_s3, 2048 }
  0x26   :  { %p472_p2 = scmp.ne.s32.totalorder %s665_s3, %s471_s26  ;;  %p475_p3 = scmp.lt.u32.totalorder %s471_s26, %s665_s3 }
  0x28   :  { %p477_p4 = pnand %p475_p3, %p472_p2 }
  0x2a   :  { %480 = shalt.err (!%p477_p4)
}
  0x2b   :  { %s481_s9 = scalar_lea.vmem %s46_s14, 2048  ;;  %p486_p6 = scmp.lt.s32.totalorder %s46_s14, %s46_s14 }
  0x2c   :  { %p482_p5 = scmp.ne.s32.totalorder %s46_s14, %s481_s9  ;;  %p487_p7 = scmp.lt.s32.totalorder %s481_s9, %s481_s9 }
  0x2e   :  { %p488_p8 = por %p487_p7, %p486_p6 }
  0x30   :  { %p489_p9 = pnand %p488_p8, %p482_p5 }
  0x32   :  { %492 = shalt.err (!%p489_p9)
}
  0x33   :  { %51 = dma.hbm_to_vmem [thread:$0]  %s665_s3, 2048, %s46_s14, [#allocation6], %s546_s7, %s546_s7, %s547_s8  }
  0x34   :  { %537 = dma.done.wait [#allocation3], 128  }
  0x35   :  { %538 = vsyncadd [#allocation3], 4294967168 }
  0x36   :  { %539 = dma.done.wait [#allocation6], 2560  }
  0x37   :  { %540 = vsyncadd [#allocation6], 4294964736  ;;  %v550_v0 = vmov 0.0|0.0   ;;  %vm551_vm0 = vmmov 0   ;;  %v552_v1 = vmov 0.0   ;;  %v64_v2 = vld [vmem:[#allocation5] sm:$0xff]  ;;  %v163_v52 = vlaneseq }
  0x38   :  { %381 = vmatprep.subr.bf16.mxu0 %v550_v0  ;;  %343 = vmatprep.mubr.msk.f32.mxu0 %vm551_vm0, %v552_v1  ;;  %v65_v3 = vld [vmem:[#allocation5 + $0x8] sm:$0xff]  ;;  %v66_v4 = vld [vmem:[#allocation5 + $0x10] sm:$0xff]  ;;  %v67_v6 = vld [vmem:[#allocation5 + $0x18] sm:$0xff]  ;;  %vm68_vm1 = vcmask 261120  }
  0x39   :  { %387 = vmatprep.subr.bf16.mxu1 %v550_v0  ;;  %378 = vmatprep.mubr.msk.f32.mxu1 %vm551_vm0, %v552_v1  ;;  %v382_v5 = vpack.c.bf16 %v65_v3, %v64_v2  ;;  %v385_v7 = vpack.c.bf16 %v67_v6, %v66_v4  ;;  %v63_v8 = vld [vmem:[#allocation2] sm:$0xff]  ;;  %v174_v9 = vld [vmem:[#allocation7] sm:$0xff]  ;;  %v175_v10 = vld [vmem:[#allocation7 + $0x8] sm:$0xff]  ;;  %v164_v53 = vshrl.u32 %v163_v52, 7 }
  0x3a   :  { %v388_v11 = vpack.c.bf16 %v175_v10, %v174_v9  ;;  %v176_v12 = vld [vmem:[#allocation7 + $0x10] sm:$0xff]  ;;  %v177_v13 = vld [vmem:[#allocation7 + $0x18] sm:$0xff]  ;;  %v178_v15 = vld [vmem:[#allocation7 + $0x20] sm:$0xff] }
  0x3b   :  { %383 = vmatpush3.bf16.msra.mxu0 %v382_v5  ;;  %v391_v14 = vpack.c.bf16 %v177_v13, %v176_v12  ;;  %v179_v16 = vld [vmem:[#allocation7 + $0x28] sm:$0xff]  ;;  %v180_v18 = vld [vmem:[#allocation7 + $0x30] sm:$0xff]  ;;  %v181_v19 = vld [vmem:[#allocation7 + $0x38] sm:$0xff]  ;;  %v165_v55 = vsub.s32 0, %v164_v53  ;;  %v170_v56 = vsub.s32 1, %v164_v53 }
  0x3c   :  { %384 = vmatprep.subr.bf16.mxu0 %v550_v0  ;;  %389 = vmatpush3.bf16.msra.mxu1 %v388_v11  ;;  %v394_v17 = vpack.c.bf16 %v179_v16, %v178_v15  ;;  %v397_v20 = vpack.c.bf16 %v181_v19, %v180_v18  ;;  %v182_v21 = vld [vmem:[#allocation7 + $0x40] sm:$0xff]  ;;  %v183_v22 = vld [vmem:[#allocation7 + $0x48] sm:$0xff]  ;;  %v184_v24 = vld [vmem:[#allocation7 + $0x50] sm:$0xff] }
  0x3d   :  { %390 = vmatprep.subr.bf16.mxu1 %v550_v0  ;;  %v400_v23 = vpack.c.bf16 %v183_v22, %v182_v21  ;;  %v185_v25 = vld [vmem:[#allocation7 + $0x58] sm:$0xff]  ;;  %v186_v27 = vld [vmem:[#allocation7 + $0x60] sm:$0xff]  ;;  %v187_v28 = vld [vmem:[#allocation7 + $0x68] sm:$0xff] }
  0x3e   :  { %v403_v26 = vpack.c.bf16 %v185_v25, %v184_v24  ;;  %v406_v29 = vpack.c.bf16 %v187_v28, %v186_v27  ;;  %v188_v30 = vld [vmem:[#allocation7 + $0x70] sm:$0xff]  ;;  %v189_v31 = vld [vmem:[#allocation7 + $0x78] sm:$0xff] }
  0x3f   :  { %386 = vmatpush3.bf16.msra.mxu0 %v385_v7  ;;  %v409_v32 = vpack.c.bf16 %v189_v31, %v188_v30  ;;  %v159_v54 = vld [vmem:[%s664_s2] sm:$0x3]  ;;  %s553_s2 = smov [#allocation9]  }
  0x40   :  { %392 = vmatpush3.bf16.msra.mxu1 %v391_v14  ;;  %v171_v60 = vrot.slane %v159_v54, %v170_v56  ;;  %s297_s12 = sshll.u32 %s553_s2, 4  ;;  %s298_s12 = int_to_ptr.vmem [resolvable:$true] %s297_s12 }
  0x41   :  { %393 = vmatprep.subr.bf16.mxu1 %v550_v0  ;;  %s493_s13 = scalar_lea.vmem %s298_s12, 128  ;;  %p498_p11 = scmp.lt.s32.totalorder %s298_s12, %s298_s12 }
  0x42   :  { %344 = vmatmul.mubr.msk.f32.vlgmr.msra.gmra.mrb[0].mxu0 %vm68_vm1, %v63_v8  ;;  %p494_p10 = scmp.ne.s32.totalorder %s298_s12, %s493_s13  ;;  %p499_p12 = scmp.lt.s32.totalorder %s493_s13, %s493_s13 }
  0x44   :  { %395 = vmatpush3.bf16.msra.mxu1 %v394_v17  ;;  %p500_p13 = por %p499_p12, %p498_p11 }
  0x45   :  { %396 = vmatprep.subr.bf16.mxu1 %v550_v0 }
  0x46   :  { %p501_p0 = pnand %p500_p13, %p494_p10 }
  0x48   :  { %398 = vmatpush3.bf16.msra.mxu1 %v397_v20 }
  0x49   :  { %399 = vmatprep.subr.bf16.mxu1 %v550_v0 }
  0x4c   :  { %401 = vmatpush3.bf16.msra.mxu1 %v400_v23 }
  0x4d   :  { %402 = vmatprep.subr.bf16.mxu1 %v550_v0 }
  0x50   :  { %404 = vmatpush3.bf16.msra.mxu1 %v403_v26 }
  0x51   :  { %405 = vmatprep.subr.bf16.mxu1 %v550_v0 }
  0x54   :  { %407 = vmatpush3.bf16.msra.mxu1 %v406_v29 }
  0x55   :  { %408 = vmatprep.subr.bf16.mxu1 %v550_v0  ;;  %v312_v0 = vld [vmem:[%s666_s4] ss:$0 sm:$0xff] }
  0x58   :  { %410 = vmatpush3.bf16.msra.mxu1 %v409_v32 }
 0x115   :  { %v138_v33 = vpop.f32.mrb[0].mxu0 }
 0x116   :  { %v142_v34 = vrot.slane %v138_v33, 4  ;;  %v345_v35 = vpop.f32.mrb[1].mxu0 }
 0x118   :  { %v143_v36 = vadd.f32 %v142_v34, %v138_v33 }
 0x11a   :  { %v144_v37 = vrot.slane %v143_v36, 2 }
 0x11c   :  { %v145_v38 = vadd.f32 %v144_v37, %v143_v36 }
 0x11e   :  { %v146_v39 = vrot.slane %v145_v38, 1 }
 0x120   :  { %v147_v40 = vadd.f32 %v146_v39, %v145_v38 }
 0x122   :  { %v149_v41 = vmul.f32 0.125, %v147_v40 }
 0x124   :  { %v150_v42 = vsub.f32 %v138_v33, %v149_v41 }
 0x126   :  { %v151_v43 = vmul.f32 %v150_v42, %v150_v42 }
 0x128   :  { %v152_v44 = vrot.slane %v151_v43, 4 }
 0x12a   :  { %v153_v45 = vadd.f32 %v152_v44, %v151_v43 }
 0x12c   :  { %v154_v46 = vrot.slane %v153_v45, 2 }
 0x12e   :  { %v155_v47 = vadd.f32 %v154_v46, %v153_v45 }
 0x130   :  { %v156_v48 = vrot.slane %v155_v47, 1 }
 0x132   :  { %v157_v49 = vadd.f32 %v156_v48, %v155_v47 }
 0x134   :  { %v158_v50 = vmul.f32 0.125, %v157_v49 }
 0x136   :  { %v160_v51 = vadd.f32 1e-05, %v158_v50 }
 0x138   :  { %421 = vrsqrt.f32 %v160_v51 }
 0x142   :  { %v422_v57 = vpop.eup %421 }
 0x143   :  { %v162_v58 = vmul.f32 %v422_v57, %v159_v54 }
 0x145   :  { %v166_v59 = vrot.slane %v162_v58, %v165_v55 }
 0x147   :  { %v167_v61 = vmul.f32 %v166_v59, %v150_v42 }
 0x149   :  { %v172_v62 = vadd.f32 %v171_v60, %v167_v61 }
 0x14b   :  { %v173_v63 = vmax.f32 %v172_v62, 0.0 }
 0x14d   :  { %379 = vmatmul.mubr.f32.vlgmr.msra.gmra.mrb[0].mxu1 %v173_v63  ;;  %280 = vst [vmem:[#allocation9] sm:$0xff] %v173_v63 }
 0x220   :  { %v263_v1 = vpop.f32.mrb[0].mxu1 }
 0x221   :  { %v264_v2 = vadd.f32 %v312_v0, %v263_v1  ;;  %v380_v3 = vpop.f32.mrb[1].mxu1 }
 0x223   :  { %267 = vmax.xlane.f32.xlu0 %v264_v2 }
 0x2b0   :  { %v268_v4 = vpop.xlane.xlu0 %267 }
 0x2b1   :  { %v269_v5 = vsub.f32 %v264_v2, %v268_v4 }
 0x2b3   :  { %v270_v6 = vmul.f32 1.442695, %v269_v5 }
 0x2b5   :  { %423 = vpow2.f32 %v270_v6 }
 0x2bf   :  { %v424_v7 = vpop.eup %423 }
 0x2c0   :  { %272 = vadd.xlane.f32.xlu0 %v424_v7 }
 0x2c1   :  { %504 = shalt.err (!%p501_p0)
}
 0x2c2   :  { %s505_s15 = scalar_lea.hbm %s668_s6, 128 }
 0x2c3   :  { %p506_p1 = scmp.ne.s32.totalorder %s668_s6, %s505_s15  ;;  %p509_p2 = scmp.lt.u32.totalorder %s505_s15, %s668_s6 }
 0x2c5   :  { %p511_p3 = pnand %p509_p2, %p506_p1 }
 0x2c7   :  { %514 = shalt.err (!%p511_p3)
}
 0x2c8   :  { %300 = dma.vmem_to_hbm [thread:$0]  %s298_s12, 128, %s668_s6, [#allocation10]  }
 0x2c9   :  { %s554_s1 = smov [#allocation8]  }
 0x2ca   :  { %s287_s22 = sshll.u32 %s554_s1, 4  ;;  %s288_s22 = int_to_ptr.vmem [resolvable:$true] %s287_s22 }
 0x2cb   :  { %s515_s23 = scalar_lea.vmem %s288_s22, 128  ;;  %p520_p5 = scmp.lt.s32.totalorder %s288_s22, %s288_s22 }
 0x2cc   :  { %p516_p4 = scmp.ne.s32.totalorder %s288_s22, %s515_s23  ;;  %p521_p6 = scmp.lt.s32.totalorder %s515_s23, %s515_s23 }
 0x2ce   :  { %p522_p7 = por %p521_p6, %p520_p5 }
 0x2d0   :  { %p523_p8 = pnand %p522_p7, %p516_p4 }
 0x34d   :  { %v273_v8 = vpop.xlane.xlu0 %272 }
 0x34e   :  { %425 = vrcp.f32 %v273_v8 }
 0x358   :  { %v426_v9 = vpop.eup %425 }
 0x359   :  { %v275_v10 = vmul.f32 %v426_v9, %v273_v8 }
 0x35b   :  { %v276_v11 = vsub.f32 2.0, %v275_v10 }
 0x35d   :  { %v277_v12 = vmul.f32 %v426_v9, %v276_v11 }
 0x35f   :  { %v278_v13 = vmul.f32 %v424_v7, %v277_v12 }
 0x361   :  { %279 = vst [vmem:[#allocation8] sm:$0xff] %v278_v13 }
 0x362   :  { %526 = shalt.err (!%p523_p8)
}
 0x363   :  { %s527_s25 = scalar_lea.hbm %s667_s5, 128 }
 0x364   :  { %p528_p9 = scmp.ne.s32.totalorder %s667_s5, %s527_s25  ;;  %p531_p10 = scmp.lt.u32.totalorder %s527_s25, %s667_s5 }
 0x366   :  { %p533_p11 = pnand %p531_p10, %p528_p9 }
 0x368   :  { %536 = shalt.err (!%p533_p11)
}
 0x369   :  { %290 = dma.vmem_to_hbm [thread:$0]  %s288_s22, 128, %s667_s5, [#allocation4]  }
 0x36a   :  { %541 = dma.done.wait [#allocation4], 128  }
 0x36b   :  { %542 = vsyncadd [#allocation4], 4294967168 }
 0x36c   :  { %543 = dma.done.wait [#allocation10], 128  }
 0x36d   :  { %544 = vsyncadd [#allocation10], 4294967168 }
 0x36e   :  { %307 = vsyncpa [#allocation3], 1 }
 0x36f   :  { %308 = vsyncpa [#allocation6], 1 }
 0x370   :  { %309 = vsyncpa [#allocation4], 1 }
 0x371   :  { %310 = vsyncpa [#allocation10], 1 }

</bundles_post_ra>
